<compile_context>
chip_gen: v7x
topology: tpu7x:2x2x1
jax: 0.10.0
libtpu: 0.0.40
codegen_flags: <defaults>
</compile_context>

<pallas_src>
import jax
import jax.numpy as jnp
from jax.experimental import pallas as pl
from jax.experimental.pallas import tpu as pltpu


# ----------------------------------------------------------------------------
# Parameter preparation (call once per weight set, outside the forward pass).
# ----------------------------------------------------------------------------
def fuse_attention_params(wq, bq, wk, bk, wv, bv, *, param_dtype=jnp.float32):
    """Fuse Q/K/V projections into one (D, 3*Dp) weight and (1, 3*Dp) bias.

    Each of the three N-blocks is zero-padded to Dp = round_up(D, 128) lanes so
    the kernel's q/k/v slices land on 128-lane boundaries (no lane relayouts).
    """
    D = wq.shape[0]
    Dp = D if D % 128 == 0 else ((D + 127) // 128) * 128

    def pad_w(w):
        return w if Dp == D else jnp.pad(w, ((0, 0), (0, Dp - D)))

    def pad_b(b):
        return b if Dp == D else jnp.pad(b, ((0, Dp - D),))

    w_qkv = jnp.concatenate([pad_w(wq), pad_w(wk), pad_w(wv)], axis=1)
    b_qkv = jnp.concatenate([pad_b(bq), pad_b(bk), pad_b(bv)], axis=0)
    return w_qkv.astype(param_dtype), b_qkv.reshape(1, 3 * Dp).astype(jnp.float32)


# ----------------------------------------------------------------------------
# Sizing helpers.
# ----------------------------------------------------------------------------
def _vmem_budget_bytes():
    """Generation-aware VMEM limit: ~55% of physical VMEM, conservative fallback."""
    try:
        cap = getattr(pltpu.get_tpu_info(), "vmem_capacity_bytes", None)
        if cap:
            return int(0.55 * cap)
    except Exception:
        pass
    return 32 * 1024 * 1024  # safe on v5e/v6e (128 MiB) and v7x (64 MiB)


def _choose_block_b(B, S, D, Dp, vmem_budget):
    """Pick the batch-block size TB."""
    # Rough per-batch-row f32 live footprint of one grid step:
    #   x/out tiles (double-buffered by the pipeline), fused qkv + q/k/v views,
    #   scores/exp/attn, ctx.
    per_b = 4 * (4 * S * D + 2 * 3 * S * Dp + 3 * S * S + 2 * S * Dp)
    fixed = 4 * (2 * D * 3 * Dp + 3 * Dp) + (1 << 20)  # weights + bias + slack
    tb_vmem = max(1, (vmem_budget - fixed) // per_b)

    tb = max(1, pl.cdiv(256, S))                        # fill the MXU M dimension
    tb = min(tb, max(1, (2 << 20) // (S * D * 4)))      # ~2 MiB x tile
    tb = min(tb, tb_vmem, B)
    tb = max(tb, 1)

    # Keep >= 2 grid steps when possible so dimension_semantics="parallel" can
    # shard batch blocks across v7x's two TensorCores (costs ~0.35us on 1-TC chips).
    if B >= 2 and pl.cdiv(B, tb) < 2:
        tb = pl.cdiv(B, 2)

    # Prefer a nearby divisor of B to avoid padded (wasted) batch rows.
    for cand in range(tb, max(1, (2 * tb) // 3) - 1, -1):
        if B % cand == 0:
            tb = cand
            break
    return tb


# ----------------------------------------------------------------------------
# Kernel.
# ----------------------------------------------------------------------------
def _make_kernel(flatten_out, mm_dtype):
    def kernel(gamma_ref, x_ref, w_qkv_ref, b_qkv_ref, o_ref):
        TB, S, D = x_ref.shape
        Dp = w_qkv_ref.shape[1] // 3

        x3 = x_ref[...]                                  # (TB, S, D) f32
        x2 = x3.reshape(TB * S, D)                       # leading-dim merge (layout-preserving)

        lhs = x2 if mm_dtype is None else x2.astype(mm_dtype)
        w = w_qkv_ref[...] if mm_dtype is None else w_qkv_ref[...].astype(mm_dtype)

        # Fused QKV projection: one MXU pass with a 3*Dp-wide N, f32 accumulation.
        qkv = jnp.dot(lhs, w, preferred_element_type=jnp.float32)
        qkv = qkv + b_qkv_ref[...]                       # (TB*S, 3Dp) + (1, 3Dp)

        # Dp is a multiple of 128 when D isn't, so these slices land on lane-tile
        # boundaries — no cross-lane relayout for q/k/v.
        q = qkv[:, 0 * Dp:1 * Dp].reshape(TB, S, Dp)
        k = qkv[:, 1 * Dp:2 * Dp].reshape(TB, S, Dp)
        v = qkv[:, 2 * Dp:3 * Dp].reshape(TB, S, Dp)

        qm = q if mm_dtype is None else q.astype(mm_dtype)
        km = k if mm_dtype is None else k.astype(mm_dtype)

        # scores = Q @ K^T per batch (no 1/sqrt(d) scaling, matching the module).
        # Zero-padded columns of q/k contribute nothing to the contraction.
        scores = jnp.einsum("bqd,bkd->bqk", qm, km,
                            preferred_element_type=jnp.float32)   # (TB, S, S)

        # Numerically stable softmax over the last dim; exact division (the
        # kernel is not EUP/VALU-bound, approx reciprocal only cost accuracy).
        m = jnp.max(scores, axis=-1, keepdims=True)
        p = jnp.exp(scores - m)
        attn = p / jnp.sum(p, axis=-1, keepdims=True)

        am = attn if mm_dtype is None else attn.astype(mm_dtype)
        vm = v if mm_dtype is None else v.astype(mm_dtype)
        ctx = jnp.einsum("bqk,bkd->bqd", am, vm,
                         preferred_element_type=jnp.float32)      # (TB, S, Dp)

        gamma = gamma_ref[0]                                      # scalar from SMEM
        out = gamma * ctx[:, :, :D] + x3                          # (TB, S, D) f32 epilogue

        if flatten_out:
            # Lane-dense store: S*D lanes per row instead of D (<128) masked lanes.
            o_ref[0] = out.reshape(TB, S * D).astype(o_ref.dtype)
        else:
            o_ref[0] = out.astype(o_ref.dtype)

    return kernel


# ----------------------------------------------------------------------------
# Wrapper.
# ----------------------------------------------------------------------------
def attention_block(x, w_qkv, b_qkv, gamma, *, block_b=None, matmul_dtype=None):
    """Pallas implementation of AttentionBlock.forward.

    x:            (B, S, D) or (B, D) float32
    w_qkv, b_qkv: fused params from fuse_attention_params (lane-padded to Dp)
    gamma:        scalar
    matmul_dtype: optional dtype (e.g. jnp.bfloat16) for MXU operands; f32 accumulation.
    """
    squeezed_in = False
    if x.ndim == 2:
        x = x[:, None, :]
        squeezed_in = True
    B, S, D = x.shape
    Dp = w_qkv.shape[1] // 3

    vmem_budget = _vmem_budget_bytes()
    tb = block_b if block_b is not None else _choose_block_b(B, S, D, Dp, vmem_budget)
    tb = max(1, min(int(tb), B))
    grid_b = pl.cdiv(B, tb)
    B_pad = grid_b * tb

    # NOTE: padded batch rows (B_pad > B) run through the full attention (softmax
    # over all-zero scores) and are sliced off — wasted but numerically benign.
    x_in = jnp.pad(x, ((0, B_pad - B), (0, 0), (0, 0))) if B_pad != B else x
    gamma_arr = jnp.asarray(gamma, jnp.float32).reshape(1)

    flatten_out = (D % 128 != 0)
    if flatten_out:
        out_shape = jax.ShapeDtypeStruct((grid_b, tb, S * D), x.dtype)
        out_spec = pl.BlockSpec((1, tb, S * D), lambda b: (b, 0, 0))
    else:
        out_shape = jax.ShapeDtypeStruct((grid_b, tb, S, D), x.dtype)
        out_spec = pl.BlockSpec((1, tb, S, D), lambda b: (b, 0, 0, 0))

    # Weights/bias are grid-invariant (constant index_map); single-buffer them
    # once they are large enough for the second buffer to matter (v7x VMEM).
    big_weights = int(w_qkv.size) * w_qkv.dtype.itemsize >= (4 << 20)
    weight_mode = pl.Buffered(1) if big_weights else None

    out = pl.pallas_call(
        _make_kernel(flatten_out, matmul_dtype),
        out_shape=out_shape,
        grid_spec=pltpu.PrefetchScalarGridSpec(
            num_scalar_prefetch=0,
            grid=(grid_b,),
            in_specs=[
                # gamma: single scalar → SMEM (scalar path), no VMEM tile.
                pl.BlockSpec(memory_space=pltpu.MemorySpace.SMEM),
                pl.BlockSpec((tb, S, D), lambda b: (b, 0, 0)),       # x block
                pl.BlockSpec((D, 3 * Dp), lambda b: (0, 0),          # fused W_qkv
                             pipeline_mode=weight_mode),
                pl.BlockSpec((1, 3 * Dp), lambda b: (0, 0),          # fused b_qkv
                             pipeline_mode=weight_mode),
            ],
            out_specs=out_spec,
        ),
        compiler_params=pltpu.CompilerParams(
            dimension_semantics=("parallel",),    # batch blocks shard across TCs (v7x)
            vmem_limit_bytes=vmem_budget,         # generation-aware cap
        ),
    )(gamma_arr, x_in, w_qkv, b_qkv)

    out = out.reshape(B_pad, S, D)[:B]
    if squeezed_in or S == 1:
        out = out[:, 0, :]   # torch's .squeeze(1) only removes the dim if it is 1
    return out


# ----------------------------------------------------------------------------
# Pure-JAX reference mirroring the torch module.
# ----------------------------------------------------------------------------
def attention_block_ref(x, wq, bq, wk, bk, wv, bv, gamma):
    squeezed_in = False
    if x.ndim == 2:
        x = x[:, None, :]
        squeezed_in = True
    q = x @ wq + bq
    k = x @ wk + bk
    v = x @ wv + bv
    scores = jnp.einsum("bqd,bkd->bqk", q, k)
    attn = jax.nn.softmax(scores, axis=-1)
    ctx = jnp.einsum("bqk,bkd->bqd", attn, v)
    out = gamma * ctx + x
    if squeezed_in or out.shape[1] == 1:
        out = out[:, 0, :]
    return out


if __name__ == "__main__":
    key = jax.random.PRNGKey(0)
    B, S, D = 2, 8, 32   # batch, seq, input_dim

    k_x, k_wq, k_bq, k_wk, k_bk, k_wv, k_bv = jax.random.split(key, 7)
    x = jax.random.normal(k_x, (B, S, D), jnp.float32)

    # torch Linear weight is (out, in); we store the transposed (in, out) form.
    bound = 1.0 / (D ** 0.5)
    wq = jax.random.uniform(k_wq, (D, D), jnp.float32, -bound, bound)
    bq = jax.random.uniform(k_bq, (D,), jnp.float32, -bound, bound)
    wk = jax.random.uniform(k_wk, (D, D), jnp.float32, -bound, bound)
    bk = jax.random.uniform(k_bk, (D,), jnp.float32, -bound, bound)
    wv = jax.random.uniform(k_wv, (D, D), jnp.float32, -bound, bound)
    bv = jax.random.uniform(k_bv, (D,), jnp.float32, -bound, bound)
    # Module initializes gamma to 0; use a nonzero value so the attention path
    # is actually exercised (deterministic, synthetic).
    gamma = jnp.float32(0.5)

    # Fuse + lane-pad the QKV params once (hoisted out of the per-call forward).
    w_qkv, b_qkv = fuse_attention_params(wq, bq, wk, bk, wv, bv)

    out = attention_block(x, w_qkv, b_qkv, gamma)
    out = jax.block_until_ready(out)

    ref = attention_block_ref(x, wq, bq, wk, bk, wv, bv, gamma)
    assert out.shape == ref.shape == (B, S, D)
    assert jnp.allclose(out, ref, atol=1e-3, rtol=1e-3)

    print("KERNEL_OK")
</pallas_src>

<mosaic_0001>
module attributes {stable_mosaic.version = 11 : i64} {
  func.func @kernel(%arg0: i32, %arg1: memref<1xf32, #tpu.memory_space<smem>>, %arg2: memref<1x8x32xf32, #tpu.memory_space<vmem>>, %arg3: memref<32x384xf32, #tpu.memory_space<vmem>>, %arg4: memref<1x384xf32, #tpu.memory_space<vmem>>, %arg5: memref<1x1x256xf32, #tpu.memory_space<vmem>>) attributes {dimension_semantics = [#tpu.dimension_semantics<parallel>], iteration_bounds = array<i64: 2>, scalar_prefetch = 0 : i64, scratch_operands = 0 : i64, tpu.core_type = #tpu.core_type<tc>, window_params = [{transform_indices = @transform_0, window_bounds = array<i64: 1>}, {transform_indices = @transform_1, window_bounds = array<i64: 1, 8, 32>}, {pipeline_mode = #tpu.pipeline_mode<synchronous>, transform_indices = @transform_2, window_bounds = array<i64: 32, 384>}, {pipeline_mode = #tpu.pipeline_mode<synchronous>, transform_indices = @transform_3, window_bounds = array<i64: 1, 384>}, {transform_indices = @transform_4, window_bounds = array<i64: 1, 1, 256>}]} {
    %c0 = arith.constant 0 : index
    %c0_0 = arith.constant 0 : index
    %c0_1 = arith.constant 0 : index
    %0 = vector.load %arg2[%c0, %c0_0, %c0_1] : memref<1x8x32xf32, #tpu.memory_space<vmem>>, vector<1x8x32xf32>
    %1 = vector.shape_cast %0 : vector<1x8x32xf32> to vector<8x32xf32>
    %c0_2 = arith.constant 0 : index
    %c0_3 = arith.constant 0 : index
    %2 = vector.load %arg3[%c0_2, %c0_3] : memref<32x384xf32, #tpu.memory_space<vmem>>, vector<32x384xf32>
    %cst = arith.constant dense<0.000000e+00> : vector<8x384xf32>
    %3 = tpu.matmul %1, %2, %cst {dimension_numbers = #tpu.dot_dimension_numbers<[1], [0], [0], [1], [0, 0, 1, 1], [], []>} : vector<8x32xf32>, vector<32x384xf32>, vector<8x384xf32> -> vector<8x384xf32>
    %c0_4 = arith.constant 0 : index
    %c0_5 = arith.constant 0 : index
    %4 = vector.load %arg4[%c0_4, %c0_5] : memref<1x384xf32, #tpu.memory_space<vmem>>, vector<1x384xf32>
    %5 = vector.broadcast %4 : vector<1x384xf32> to vector<8x384xf32>
    %6 = arith.addf %3, %5 : vector<8x384xf32>
    %7 = vector.extract_strided_slice %6 {offsets = [0, 0], sizes = [8, 128], strides = [1, 1]} : vector<8x384xf32> to vector<8x128xf32>
    %8 = vector.shape_cast %7 : vector<8x128xf32> to vector<1x8x128xf32>
    %9 = vector.extract_strided_slice %6 {offsets = [0, 128], sizes = [8, 128], strides = [1, 1]} : vector<8x384xf32> to vector<8x128xf32>
    %10 = vector.shape_cast %9 : vector<8x128xf32> to vector<1x8x128xf32>
    %11 = vector.extract_strided_slice %6 {offsets = [0, 256], sizes = [8, 128], strides = [1, 1]} : vector<8x384xf32> to vector<8x128xf32>
    %12 = vector.shape_cast %11 : vector<8x128xf32> to vector<1x8x128xf32>
    "tpu.trace_start"() <{level = 10 : i32, message = "bqd,bkd->bqk"}> : () -> ()
    %cst_6 = arith.constant dense<0.000000e+00> : vector<1x8x8xf32>
    %13 = tpu.matmul %8, %10, %cst_6 {dimension_numbers = #tpu.dot_dimension_numbers<[2], [2], [1], [1], [0, 0, 0, 1, 1, 1], [0], [0]>} : vector<1x8x128xf32>, vector<1x8x128xf32>, vector<1x8x8xf32> -> vector<1x8x8xf32>
    "tpu.trace_stop"() : () -> ()
    %cst_7 = arith.constant dense<0xFF800000> : vector<1x8xf32>
    %14 = vector.multi_reduction <maximumf>, %13, %cst_7 [2] : vector<1x8x8xf32> to vector<1x8xf32>
    %15 = vector.shape_cast %14 : vector<1x8xf32> to vector<1x8x1xf32>
    %16 = vector.broadcast %15 : vector<1x8x1xf32> to vector<1x8x8xf32>
    %17 = arith.subf %13, %16 : vector<1x8x8xf32>
    %18 = math.exp %17 : vector<1x8x8xf32>
    %cst_8 = arith.constant dense<0.000000e+00> : vector<1x8xf32>
    %19 = vector.multi_reduction <add>, %18, %cst_8 [2] : vector<1x8x8xf32> to vector<1x8xf32>
    %20 = vector.shape_cast %19 : vector<1x8xf32> to vector<1x8x1xf32>
    %21 = vector.broadcast %20 : vector<1x8x1xf32> to vector<1x8x8xf32>
    %22 = arith.divf %18, %21 : vector<1x8x8xf32>
    "tpu.trace_start"() <{level = 10 : i32, message = "bqk,bkd->bqd"}> : () -> ()
    %cst_9 = arith.constant dense<0.000000e+00> : vector<1x8x128xf32>
    %23 = tpu.matmul %22, %12, %cst_9 {dimension_numbers = #tpu.dot_dimension_numbers<[2], [1], [1], [2], [0, 0, 0, 1, 1, 2], [0], [0]>} : vector<1x8x8xf32>, vector<1x8x128xf32>, vector<1x8x128xf32> -> vector<1x8x128xf32>
    "tpu.trace_stop"() : () -> ()
    %c0_10 = arith.constant 0 : index
    %24 = memref.load %arg1[%c0_10] : memref<1xf32, #tpu.memory_space<smem>>
    %25 = vector.extract_strided_slice %23 {offsets = [0, 0, 0], sizes = [1, 8, 32], strides = [1, 1, 1]} : vector<1x8x128xf32> to vector<1x8x32xf32>
    %26 = vector.broadcast %24 : f32 to vector<1x8x32xf32>
    %27 = arith.mulf %26, %25 : vector<1x8x32xf32>
    %28 = arith.addf %27, %0 : vector<1x8x32xf32>
    %29 = vector.shape_cast %28 : vector<1x8x32xf32> to vector<1x256xf32>
    %c0_11 = arith.constant 0 : index
    %c0_12 = arith.constant 0 : index
    %c0_13 = arith.constant 0 : index
    %30 = vector.load %arg5[%c0_11, %c0_12, %c0_13] : memref<1x1x256xf32, #tpu.memory_space<vmem>>, vector<1x1x256xf32>
    %31 = vector.shape_cast %30 : vector<1x1x256xf32> to vector<1x256xf32>
    %32 = vector.shape_cast %29 : vector<1x256xf32> to vector<1x1x256xf32>
    tpu.vector_store %arg5[%c0_11, %c0_12, %c0_13], %32 {strides = array<i32>} : memref<1x1x256xf32, #tpu.memory_space<vmem>>, vector<1x1x256xf32>,
    return
  }
  func.func @transform_0(%arg0: i32) -> i32 {
    %c0_i32 = arith.constant 0 : i32
    %c0_i32_0 = arith.constant 0 : i32
    return %c0_i32 : i32
  }
  func.func @transform_1(%arg0: i32) -> (i32, i32, i32) {
    %c0_i32 = arith.constant 0 : i32
    %c0_i32_0 = arith.constant 0 : i32
    %c0_i32_1 = arith.constant 0 : i32
    return %arg0, %c0_i32, %c0_i32_0 : i32, i32, i32
  }
  func.func @transform_2(%arg0: i32) -> (i32, i32) {
    %c0_i32 = arith.constant 0 : i32
    %c0_i32_0 = arith.constant 0 : i32
    %c0_i32_1 = arith.constant 0 : i32
    return %c0_i32, %c0_i32_0 : i32, i32
  }
  func.func @transform_3(%arg0: i32) -> (i32, i32) {
    %c0_i32 = arith.constant 0 : i32
    %c0_i32_0 = arith.constant 0 : i32
    %c0_i32_1 = arith.constant 0 : i32
    return %c0_i32, %c0_i32_0 : i32, i32
  }
  func.func @transform_4(%arg0: i32) -> (i32, i32, i32) {
    %c0_i32 = arith.constant 0 : i32
    %c0_i32_0 = arith.constant 0 : i32
    %c0_i32_1 = arith.constant 0 : i32
    return %arg0, %c0_i32, %c0_i32_0 : i32, i32, i32
  }
}

</mosaic_0001>

<bundles_post_ra>
// kernel: tpu_custom_call.1
= control target key start
LH: loop header
LB: loop body
LE: loop exit
PB: predicated region body
PF: predicated region fallthrough
CT: control target
= control target key end

     0   :  { %s1307_s0 = inlined_call_operand.<no memory space> [shape: f32[1], index: 0, kind: input, shape index: {}]   ;;  %s1308_s1 = inlined_call_operand.hbm [shape: f32[2,8,32], index: 1, kind: input, shape index: {}]   ;;  %s1309_s2 = inlined_call_operand.hbm [shape: f32[32,384], index: 2, kind: input, shape index: {}]   ;;  %s1310_s3 = inlined_call_operand.vmem [shape: f32[1,384], index: 3, kind: input, shape index: {}]   ;;  %s1311_s4 = inlined_call_operand.hbm [shape: f32[2,1,256], index: 4, kind: output, shape index: {}]  }
   0x1   :  { %9 = sst [smem:[#allocation2]] %s1307_s0 }
   0x2   :  { %10 = vsyncpa [#allocation4], 0 }
   0x3   :  { %12 = vsyncpa [#allocation4 + $0x1], 0 }
   0x4   :  { %13 = vsyncpa [#allocation7], 0 }
   0x5   :  { %14 = vsyncpa [#allocation5], 0 }
   0x6   :  { %16 = vsyncpa [#allocation5 + $0x1], 0  ;;  %s1069_s17 = smov 0   ;;  %s1071_s18 = smov 0  }
   0x7   :  { %s1073_s19 = smov 0   ;;  %s1075_s20 = smov 0  }
   0x8 LB: > { %s1090_s0 = sadd.s32 4294967295, %s1025_s20   ;;  %s762_s21 = sadd.s32 4294967294, %s1025_s20   ;;  %s1025_s20 = sphi %s1075_s20, %s1331_s20   ;;  %s1021_s19 = sphi %s1073_s19, %s1330_s19   ;;  %s1017_s18 = sphi %s1071_s18, %s1329_s18   ;;  %s1013_s17 = sphi %s1069_s17, %s1328_s17  }
   0x9   : > { %p63_p0 = scmp.ne.s32.totalorder %s1017_s18, %s1013_s17  ;;  %p1312_p1 = scmp.eq.s32.totalorder %s1090_s0, 0 }
   0xa   : > { %p135_p3 = scmp.eq.s32.totalorder %s762_s21, 1  ;;  %p763_p5 = scmp.ge.s32.totalorder %s1025_s20, 1 }
   0xb   : > { %p1099_p4 = por %p1312_p1, %p63_p0  ;;  %p142_p7 = scmp.lt.s32.totalorder %s1025_s20, 3 }
   0xc   : > { %p1104_p6 = por %p135_p3, %p63_p0  ;;  %s1027_s25 = smov [#allocation6]  }
   0xd   : > { %s1315_s22 = scalar_select %p1099_p4, 1, 0 }
   0xe   : > { %s1316_s23 = scalar_select %p1104_p6, 1, 0 }
   0xf   : > { %p1109_p8 = pnand %p763_p5, %p142_p7  ;;  %s157_s26 = sshll.u32 %s1027_s25, 4  ;;  %s1113_s26 = int_to_ptr.vmem [resolvable:$true] %s157_s26 }
  0x10   : > { %s1125_s28 = sadd.s32 1, %s1025_s20   ;;  %s50_s29 = sadd.s32 1, %s1021_s19 }
  0x11   : > { %s1317_s24 = scalar_select %p1109_p8, 1, 0 }
  0x12   : > { %p833_p9 = pneg %p1109_p8  ;;  %s47_s30 = ssub.s32 %s1025_s20, %s1125_s28 }
  0x13   : > { %s897_s7 = scalar_lea.hbm %s1309_s2, 1536 }
  0x14   : > { %p1120_p11 = pnand %p833_p9, %p1312_p1  ;;  %p898_p12 = scmp.ne.s32.totalorder %s1309_s2, %s897_s7 }
  0x15   : > { %p904_p5 = scmp.lt.u32.totalorder %s897_s7, %s1309_s2 }
  0x16   : > { %p899_p13 = pneg %p1120_p11 }
  0x18   : > { %p900_p0 = pnand %p899_p13, %p898_p12 }
  0x1a   : > { %p901_p3 = pneg %p900_p0 }
  0x1c   : > { %p906_p7 = pnand %p904_p5, %p901_p3 }
  0x1e   : > { %909 = shalt.err (!%p906_p7)
}
  0x1f   : > { %s910_s12 = scalar_lea.vmem %s1113_s26, 1536  ;;  %p918_p2 = scmp.lt.s32.totalorder %s1113_s26, %s1113_s26 }
  0x20   : > { %p911_p9 = scmp.ne.s32.totalorder %s1113_s26, %s910_s12  ;;  %p919_p6 = scmp.lt.s32.totalorder %s910_s12, %s910_s12 }
  0x22   : > { %p913_p10 = pnand %p911_p9, %p899_p13  ;;  %p920_p4 = por %p919_p6, %p918_p2 }
  0x24   : > { %p914_p1 = pneg %p913_p10 }
  0x26   : > { %p921_p8 = pnand %p920_p4, %p914_p1 }
  0x28   : > { %924 = shalt.err (!%p921_p8)
}
  0x29   : > { %s1028_s13 = smov 384   ;;  %s1029_s14 = smov 24  }
  0x2a   : > { %836 = dma.hbm_to_vmem [thread:$0]  (!%p1120_p11), %s1309_s2, 1536, %s1113_s26, [#allocation7], %s1028_s13, %s1028_s13, %s1029_s14  }
  0x2b   : > { %p48_p2 = scmp.eq.s32.totalorder %s47_s30, 0  ;;  %p57_p1 = scmp.ne.s32.totalorder %s1021_s19, %s1017_s18 }
  0x2c   : > { %p58_p4 = scmp.eq.s32.totalorder %s1025_s20, 0  ;;  %p846_p6 = scmp.lt.s32.totalorder %s1025_s20, 2 }
  0x2d   : > { %s1156_s21 = scalar_select %p48_p2, %s1021_s19, %s50_s29  }
  0x2e   : > { %p59_p8 = por %p58_p4, %p57_p1  ;;  %p1319_p10 = scmp.eq.s32.totalorder %s1090_s0, 1 }
  0x2f   : > { %s174_s5 = sand.u32 1, %s1021_s19   ;;  %s767_s6 = sshll.u32 %s1025_s20, 7 }
  0x30   : > { %p1160_p12 = por %p1319_p10, %p57_p1  ;;  %s766_s7 = sshll.u32 %s174_s5, 3 }
  0x31   : > { %s1169_s9 = scalar_lea.hbm %s1308_s1, %s767_s6  ;;  %s178_s26 = scalar_lea.vmem [#allocation3], %s766_s7 }
  0x32   : > { %s185_s29 = sshll.u32 %s178_s26, 4  ;;  %p1171_p11 = pnand %p846_p6, %p59_p8  ;;  %s1175_s29 = int_to_ptr.vmem [resolvable:$true] %s185_s29 }
  0x33   : > { %s175_s10 = scalar_lea.sflag [#allocation4], %s174_s5  ;;  %s925_s11 = scalar_lea.hbm %s1169_s9, 128 }
  0x34   : > { %p926_p13 = scmp.ne.s32.totalorder %s1169_s9, %s925_s11  ;;  %p927_p0 = pneg %p1171_p11 }
  0x35   : > { %s930_s14 = scalar_lea.hbm %s1308_s1, 256  ;;  %p931_p7 = scmp.lt.u32.totalorder %s1169_s9, %s1308_s1 }
  0x36   : > { %p928_p3 = pnand %p927_p0, %p926_p13  ;;  %p932_p9 = scmp.lt.u32.totalorder %s930_s14, %s925_s11 }
  0x37   : > { %p934_p1 = scmp.lt.u32.totalorder %s925_s11, %s1169_s9 }
  0x38   : > { %p929_p5 = pneg %p928_p3  ;;  %p933_p2 = por %p932_p9, %p931_p7 }
  0x3a   : > { %p935_p4 = por %p934_p1, %p933_p2 }
  0x3c   : > { %p936_p6 = pnand %p935_p4, %p929_p5 }
  0x3e   : > { %939 = shalt.err (!%p936_p6)
}
  0x3f   : > { %s940_s5 = scalar_lea.vmem %s1175_s29, 128  ;;  %s1030_s6 = smov [#allocation3]  }
  0x40   : > { %p941_p8 = scmp.ne.s32.totalorder %s1175_s29, %s940_s5  ;;  %s945_s7 = sshll.u32 %s1030_s6, 4  ;;  %s946_s7 = int_to_ptr.vmem [resolvable:$false] %s945_s7 }
  0x41   : > { %s947_s27 = scalar_lea.vmem %s946_s7, 256  ;;  %p948_p3 = scmp.lt.s32.totalorder %s1175_s29, %s946_s7 }
  0x42   : > { %p943_p10 = pnand %p941_p8, %p927_p0  ;;  %p949_p7 = scmp.lt.s32.totalorder %s947_s27, %s940_s5 }
  0x44   : > { %p944_p13 = pneg %p943_p10  ;;  %p950_p9 = por %p949_p7, %p948_p3 }
  0x46   : > { %p951_p2 = pnand %p950_p9, %p944_p13 }
  0x48   : > { %954 = shalt.err (!%p951_p2)
}
  0x49   : > { %840 = dma.hbm_to_vmem [thread:$0]  (!%p1171_p11), %s1169_s9, 128, %s1175_s29, %s175_s10  }
  0x4a   : > { %p1322_p5 = scmp.ne.s32.totalorder %s1317_s24, 0 }
  0x4b   : > { %s1205_s8 = sand.u32 (!%p1322_p5), 1, %s1017_s18   ;;  %p1323_p0 = scmp.ne.s32.totalorder (!%p1322_p5), %s1315_s22, 0 }
  0x4c   : > { %194 = sbr.rel (%p1322_p5) target bundleno = 1216 (0x4c0), region = 36  ;;  %s769_s26 = sshll.u32 (!%p1322_p5), %s1205_s8, 3 }
  0x4d   : > { %s197_s11 = scalar_lea.sflag (!%p1322_p5), [#allocation4], %s1205_s8  ;;  %s200_s12 = scalar_lea.vmem (!%p1322_p5), [#allocation3], %s769_s26 }
  0x53   : > { %1000 = dma.done.wait (%p1323_p0), %s197_s11, 128  }
  0x54   : > { %1002 = vsyncadd (%p1323_p0), %s197_s11, 4294967168  ;;  %p1324_p1 = scmp.eq.s32.totalorder %s1090_s0, 0 }
  0x56   : > { %1004 = dma.done.wait (%p1324_p1), [#allocation7], 1536   ;;  %p1325_p11 = pmov %p1324_p1 }
  0x57   : > { %v1031_v0 = vmov 0.0   ;;  %v231_v1 = vld [vmem:[#allocation6 + $0x8] sm:$0xff]  ;;  %v234_v2 = vld [vmem:[#allocation6 + $0x20] sm:$0xff]  ;;  %v233_v5 = vld [vmem:[#allocation6 + $0x18] sm:$0xff]  ;;  %vm259_vm0 = vcmask 261120   ;;  %vm1032_vm1 = vmmov 0   ;;  %v244_v14 = vlaneseq }
  0x58   : > { %1006 = vsyncadd (%p1325_p11), [#allocation7], 4294965760  ;;  %327 = vmatprep.mubr.f32.mxu0 %v1031_v0  ;;  %v230_v3 = vld [vmem:[#allocation6] sm:$0xff]  ;;  %v811_v4 = vpack.c.bf16 %v234_v2, %v231_v1  ;;  %v237_v6 = vld [vmem:[#allocation6 + $0x38] sm:$0xff]  ;;  %798 = vmatprep.mubr.msk.f32.mxu1 %vm1032_vm1, %v1031_v0  ;;  %v1033_v28 = vmov 0.0|0.0   ;;  %vm474_vm2 = vcmask 64512  }
  0x59   : > { %v240_v7 = vld [vmem:[#allocation6 + $0x50] sm:$0xff]  ;;  %v813_v8 = vpack.c.bf16 %v233_v5, %v230_v3  ;;  %v239_v11 = vld [vmem:[#allocation6 + $0x48] sm:$0xff]  ;;  %v1228_v15 = vshrl.u32 %v244_v14, 7  ;;  %v238_v27 = vld [vmem:[#allocation6 + $0x40] sm:$0xff]  ;;  %819 = vmatprep.subr.bf16.mxu1 %v1033_v28  ;;  %s559_s9 = sld [smem:[#allocation2]]  ;;  %s1036_s29 = smov 32  }
  0x5a   : > { %v815_v9 = vpack.c.bf16 %v240_v7, %v237_v6  ;;  %v236_v10 = vld [vmem:[#allocation6 + $0x30] sm:$0xff]  ;;  %812 = vmatprep.subr.bf16.mxu0 %v811_v4  ;;  %v235_v26 = vld [vmem:[#allocation6 + $0x28] sm:$0xff]  ;;  %v241_v30 = vld [vmem:[#allocation6 + $0x58] sm:$0xff]  ;;  %v1034_v48 = vmov 1983009808   ;;  %s1037_s30 = smov 64  }
  0x5b   : > { %814 = vmatpush1.bf16.msra.mxu0 %v813_v8  ;;  %v817_v12 = vpack.c.bf16 %v239_v11, %v236_v10  ;;  %v1218_v13 = vld [vmem:[%s200_s12] sm:$0xff]  ;;  %v250_v16 = vsub.s32 1, %v1228_v15  ;;  %v246_v18 = vsub.s32 0, %v1228_v15  ;;  %v823_v31 = vpack.c.bf16 %v241_v30, %v238_v27  ;;  %s1038_s10 = smov 96   ;;  %s771_s13 = sshll.u32 %s1205_s8, 1 }
  0x5c   : > { %816 = vmatprep.subr.bf16.mxu0 %v815_v9  ;;  %v242_v17 = vld [vmem:[%s1310_s3] sm:$0x7]  ;;  %v254_v40 = vsub.s32 2, %v1228_v15  ;;  %v565_v49 = vunpack.c.l.s4 %v1034_v48  ;;  %v1035_v50 = vmov 1934713408   ;;  %vm637_vm3 = vcmask 523264  }
  0x5d   : > { %v251_v19 = vrot.slane %v242_v17, %v250_v16  ;;  %v247_v21 = vrot.slane %v242_v17, %v246_v18  ;;  %v232_v25 = vld [vmem:[#allocation6 + $0x10] sm:$0xff]  ;;  %v580_v51 = vunpack.c.l.s4 %v1035_v50  ;;  %v1039_v16 = vmov 1966171168   ;;  %s780_s14 = sshll.u32 %s1090_s0, 5  ;;  %s228_s15 = scalar_lea.vmem [#allocation8], %s771_s13 }
  0x5e   : > { %v820_v29 = vpack.c.bf16 %v235_v26, %v232_v25  ;;  %v255_v41 = vrot.slane %v242_v17, %v254_v40  ;;  %v566_v52 = vunpack.c.0.s8 %v565_v49  ;;  %v648_v17 = vunpack.c.l.s4 %v1039_v16  ;;  %s682_s16 = sshll.u32 %s228_s15, 4  ;;  %s1263_s7 = scalar_lea.hbm %s1311_s4, %s780_s14  ;;  %s1265_s16 = int_to_ptr.vmem [resolvable:$true] %s682_s16 }
  0x5f   : > { %818 = vmatpush1.bf16.msra.mxu0 %v817_v12  ;;  %v560_v53 = vstv %s559_s9  ;;  %v581_v54 = vunpack.c.0.s8 %v580_v51  ;;  %vm639_vm4 = vcmask 785408   ;;  %vm664_vm5 = vcmp.lt.s32.totalorder %v244_v14, 256  ;;  %s668_s27 = scalar_lea.sflag [#allocation5], %s1205_s8  ;;  %s955_s26 = scalar_lea.vmem %s1265_s16, 32 }
  0x60   : > { %801 = vmatprep.subr.mxu0 %v1031_v0  ;;  %821 = vmatpush3.bf16.msra.mxu1 %v820_v29  ;;  %v569_v57 = vsub.s32 %v566_v52, %v1228_v15  ;;  %p956_p4 = scmp.ne.s32.totalorder %s1265_s16, %s955_s26  ;;  %s1040_s0 = smov [#allocation8]  }
  0x61   : > { %822 = vmatprep.subr.bf16.mxu1 %v1033_v28  ;;  %v584_v60 = vsub.s32 %v581_v54, %v1228_v15  ;;  %s959_s11 = sshll.u32 %s1040_s0, 4  ;;  %s960_s11 = int_to_ptr.vmem [resolvable:$false] %s959_s11 }
  0x62   : > { %772 = vmatmul.mubr.msk.f32.vlgmr.msra.gmra.mrb[0].mxu0 %vm259_vm0, %v1218_v13  ;;  %p957_p6 = pnand %p956_p4, %p1160_p12  ;;  %s961_s12 = scalar_lea.vmem %s960_s11, 64 }
  0x63   : > { %803 = vmatprep.mubr.msk.f32.mxu0 %vm1032_vm1, %v1031_v0  ;;  %p962_p10 = scmp.lt.s32.totalorder %s1265_s16, %s960_s11  ;;  %p963_p13 = scmp.lt.s32.totalorder %s961_s12, %s955_s26 }
  0x64   : > { %824 = vmatpush3.bf16.msra.mxu1 %v823_v31  ;;  %p958_p8 = pneg %p957_p6 }
  0x65   : > { %806 = vmatprep.subr.mxu1 %v1031_v0  ;;  %p964_p3 = por %p963_p13, %p962_p10 }
  0x67   : > { %799 = vmatmul.mubr.msk.f32.vlgmr.msra.gmra.mrb[0].mxu1 %vm259_vm0, %v1218_v13  ;;  %p965_p7 = pnand %p964_p3, %p958_p8 }
  0x68   : > { %808 = vmatprep.mubr.msk.f32.mxu1 %vm1032_vm1, %v1031_v0 }
 0x135   : > { %v329_v20 = vpop.f32.mrb[0].mxu0 }
 0x136   : > { %v331_v22 = vpop.f32.mrb[1].mxu0  ;;  %v330_v24 = vadd.f32 %v329_v20, %v247_v21 }
 0x137   : > { %v332_v23 = vadd.f32 %v331_v22, %v251_v19  ;;  %v649_v19 = vunpack.c.0.s8 %v648_v17 }
 0x139   : > { %802 = vmatpush3.xpose.msra.mxu0 %v332_v23 }
 0x13a   : > { %v400_v42 = vpop.f32.mrb[0].mxu1 }
 0x13b   : > { %v800_v43 = vpop.f32.mrb[1].mxu1  ;;  %v401_v44 = vadd.f32 %v400_v42, %v255_v41 }
 0x13c   : > { %804 = vmatmul.mubr.f32.vlgmr.msra.gmra.mrb[2].mxu0 %v330_v24  ;;  %v652_v24 = vsub.s32 %v649_v19, %v1228_v15 }
 0x13d   : > { %807 = vmatpush3.msra.mxu1 %v401_v44 }
 0x20f   : > { %v470_v32 = vpop.f32.mrb[2].mxu0 }
 0x210   : > { %v805_v33 = vpop.f32.mrb[3].mxu0  ;;  %v475_v34 = vsel %vm474_vm2, %v470_v32, -inf }
 0x211   : > { %476 = vmax.xlane.f32.xlu0 %v475_v34 }
 0x29e   : > { %v477_v35 = vpop.xlane.xlu0 %476 }
 0x29f   : > { %v478_v36 = vsub.f32 %v470_v32, %v477_v35 }
 0x2a1   : > { %v479_v37 = vmul.f32 1.442695, %v478_v36 }
 0x2a3   : > { %893 = vpow2.f32 %v479_v37 }
 0x2ad   : > { %v894_v38 = vpop.eup %893 }
 0x2ae   : > { %v481_v39 = vsel %vm474_vm2, %v894_v38, 0.0 }
 0x2af   : > { %482 = vadd.xlane.f32.xlu0 %v481_v39 }
 0x33c   : > { %v483_v45 = vpop.xlane.xlu0 %482 }
 0x33d   : > { %895 = vrcp.f32 %v483_v45 }
 0x347   : > { %v896_v46 = vpop.eup %895 }
 0x348   : > { %v485_v47 = vmul.f32 %v896_v46, %v894_v38 }
 0x34a   : > { %809 = vmatmul.mubr.msk.f32.vlgmr.msra.gmra.mrb[2].mxu1 %vm474_vm2, %v485_v47 }
 0x41d   : > { %v555_v55 = vpop.f32.mrb[2].mxu1 }
 0x41e   : > { %v561_v56 = vmul.f32 %v560_v53, %v555_v55  ;;  %v810_v58 = vpop.f32.mrb[3].mxu1 }
 0x420   : > { %v562_v59 = vadd.f32 %v561_v56, %v1218_v13 }
 0x422   : > { %v563_v61 = vcombine.high %v562_v59, %v1031_v0  ;;  %v570_v62 = vrot.slane %v562_v59, %v569_v57 }
 0x424   : > { %v577_v63 = vrot.slane %v563_v61, %v569_v57  ;;  %v585_v1 = vrot.slane %v570_v62, %v584_v60  ;;  %v578_v2 = vcombine.high %v570_v62, %v1031_v0 }
 0x426   : > { %v608_v3 = vcombine.high %v585_v1, %v1031_v0  ;;  %v592_v4 = vrot.slane %v578_v2, %v584_v60  ;;  %v600_v5 = vrot.slane %v577_v63, %v584_v60  ;;  %v593_v7 = vcombine.high %v577_v63, %v1031_v0 }
 0x428   : > { %613 = vrot.lane.b32.xlu1 %v608_v3, %s1036_s29  ;;  %617 = vrot.lane.b32.xlu0 %v592_v4, %s1037_s30  ;;  %v610_v6 = vcombine.high %v600_v5, %v1031_v0  ;;  %v607_v8 = vrot.slane %v593_v7, %v584_v60  ;;  %v609_v9 = vcombine.high %v592_v4, %v1031_v0 }
 0x42a   : > { %v611_v10 = vcombine.high %v607_v8, %v1031_v0 }
 0x42c   : > { %625 = vrot.lane.b32.xlu1 %v610_v6, %s1036_s29 }
 0x430   : > { %629 = vrot.lane.b32.xlu1 %v607_v8, %s1037_s30 }
 0x434   : > { %621 = vrot.lane.b32.xlu1 %v609_v9, %s1038_s10 }
 0x438   : > { %633 = vrot.lane.b32.xlu1 %v611_v10, %s1038_s10 }
 0x49a   : > { %v614_v11 = vpop.permute.xlu1 %613  ;;  %v618_v21 = vpop.permute.xlu0 %617 }
 0x49b   : > { %v636_v20 = vsel %vm259_vm0, %v585_v1, %v614_v11 }
 0x49c   : > { %v638_v23 = vsel %vm637_vm3, %v636_v20, %v618_v21 }
 0x49e   : > { %v626_v12 = vpop.permute.xlu1 %625 }
 0x49f   : > { %v641_v22 = vsel %vm259_vm0, %v600_v5, %v626_v12 }
 0x4a2   : > { %v630_v13 = vpop.permute.xlu1 %629 }
 0x4a3   : > { %v642_v0 = vsel %vm637_vm3, %v641_v22, %v630_v13 }
 0x4a6   : > { %v622_v18 = vpop.permute.xlu1 %621 }
 0x4a7   : > { %v640_v26 = vsel %vm639_vm4, %v638_v23, %v622_v18 }
 0x4aa   : > { %v634_v25 = vpop.permute.xlu1 %633 }
 0x4ab   : > { %v643_v27 = vsel %vm639_vm4, %v642_v0, %v634_v25 }
 0x4ac   : > { %v646_v28 = vcombine.low %v640_v26, %v643_v27 }
 0x4ae   : > { %v653_v29 = vrot.slane %v646_v28, %v652_v24 }
 0x4b0   : > { %v660_v30 = vrot.slane %v653_v29, %v652_v24 }
 0x4b2   : > { %666 = vst.msk [vmem:[%s228_s15] sm:$0x3] %vm664_vm5, %v660_v30 }
 0x4b3   : > { %968 = shalt.err (!%p965_p7)
}
 0x4b4   : > { %s969_s8 = scalar_lea.hbm %s1263_s7, 32  ;;  %s973_s9 = scalar_lea.hbm %s1311_s4, 64 }
 0x4b5   : > { %p970_p9 = scmp.ne.s32.totalorder %s1263_s7, %s969_s8  ;;  %p974_p0 = scmp.lt.u32.totalorder %s1263_s7, %s1311_s4 }
 0x4b6   : > { %p975_p1 = scmp.lt.u32.totalorder %s973_s9, %s969_s8  ;;  %p977_p4 = scmp.lt.u32.totalorder %s969_s8, %s1263_s7 }
 0x4b7   : > { %p971_p2 = pnand %p970_p9, %p1160_p12 }
 0x4b8   : > { %p976_p11 = por %p975_p1, %p974_p0 }
 0x4b9   : > { %p972_p5 = pneg %p971_p2 }
 0x4ba   : > { %p978_p6 = por %p977_p4, %p976_p11 }
 0x4bc   : > { %p979_p8 = pnand %p978_p6, %p972_p5 }
 0x4be   : > { %982 = shalt.err (!%p979_p8)
}
 0x4bf   : > { %831 = dma.vmem_to_hbm [thread:$0]  (%p1160_p12), %s1265_s16, 32, %s1263_s7, %s668_s27  }
 0x4c0 PF: > { %s694_s10 = sand.u32 1, %s1013_s17   ;;  %p1326_p10 = scmp.ne.s32.totalorder %s1316_s23, 0 }
 0x4c1   : > { %p1327_p13 = scmp.ge.s32.totalorder %s1025_s20, 2  ;;  %s695_s13 = scalar_lea.sflag [#allocation5], %s694_s10 }
 0x4c3   : > { %p842_p3 = pnand %p1327_p13, %p1326_p10 }
 0x4c5   : > { %1008 = dma.done.wait (!%p842_p3), %s695_s13, 32  }
 0x4c6   : > { %1010 = vsyncadd (!%p842_p3), %s695_s13, 4294967264  ;;  %p19_p7 = scmp.ge.s32.totalorder %s1125_s28, 4   ;;  %s1328_s17 = smov %s1017_s18 }
 0x4c7   : > { %s1329_s18 = smov %s1021_s19  ;;  %s1330_s19 = smov %s1156_s21 }
 0x4c8   : > { %s1331_s20 = smov %s1125_s28  ;;  %21 = sbr.rel (!%p19_p7) target bundleno = 8 (0x8), region = 85 }
 0x4cf   :  { %700 = vsyncpa [#allocation4], 1 }
 0x4d0   :  { %702 = vsyncpa [#allocation4 + $0x1], 1 }
 0x4d1   :  { %703 = vsyncpa [#allocation7], 1 }
 0x4d2   :  { %704 = vsyncpa [#allocation5], 1 }
 0x4d3   :  { %706 = vsyncpa [#allocation5 + $0x1], 1 }

</bundles_post_ra>
